<compile_context>
chip_gen: v7x
topology: tpu7x:2x2x1
jax: 0.10.0
libtpu: 0.0.40
codegen_flags: <defaults>
</compile_context>

<pallas_src>
import jax
import jax.numpy as jnp
from jax.experimental import pallas as pl
from jax.experimental.pallas import tpu as pltpu


def _make_clone_kernel(chunk_bounds):
    """Builds a kernel that copies x -> o with one HBM->HBM DMA per chunk.

    `chunk_bounds` is a static tuple of Python ints: chunk c covers rows
    [chunk_bounds[c], chunk_bounds[c+1]) of the leading axis.
    """
    num_chunks = len(chunk_bounds) - 1

    def kernel(x_hbm, o_hbm, sems):
        if num_chunks == 1:
            # Single DMA over the whole array (small / un-chunkable inputs).
            cp = pltpu.make_async_copy(x_hbm, o_hbm, sems.at[0])
            cp.start()
            cp.wait()
            return

        # Issue every chunk DMA first (multiple DMAs in flight saturate HBM
        # bandwidth), then wait on all of them.
        copies = []
        for c in range(num_chunks):
            lo = chunk_bounds[c]
            sz = chunk_bounds[c + 1] - chunk_bounds[c]
            cp = pltpu.make_async_copy(
                x_hbm.at[pl.ds(lo, sz)],
                o_hbm.at[pl.ds(lo, sz)],
                sems.at[c],
            )
            cp.start()
            copies.append(cp)
        for cp in copies:
            cp.wait()

    return kernel


def identity(
    x: jax.Array,
    *,
    max_chunks: int = 8,
    min_bytes_per_chunk: int = 4 << 20,  # only chunk once the copy is >= 4 MiB/chunk
) -> jax.Array:
    """Pallas equivalent of Identity.forward: returns a fresh copy of `x`."""
    if x.size == 0:
        # Nothing to copy; an empty (immutable) array is its own clone.
        return x

    orig_shape = x.shape
    if x.ndim == 0:
        x = x.reshape(1)  # give the DMA at least one axis to address

    d0 = x.shape[0]
    nbytes = x.size * x.dtype.itemsize

    # Chunk along the leading axis for large inputs so several DMAs run
    # concurrently; one DMA (lowest overhead) for small inputs.
    num_chunks = max(1, min(max_chunks, d0, nbytes // max(1, min_bytes_per_chunk)))
    base, rem = divmod(d0, num_chunks)
    bounds = [0]
    for c in range(num_chunks):
        bounds.append(bounds[-1] + base + (1 if c < rem else 0))
    bounds = tuple(bounds)

    out = pl.pallas_call(
        _make_clone_kernel(bounds),
        out_shape=jax.ShapeDtypeStruct(x.shape, x.dtype),
        in_specs=[pl.BlockSpec(memory_space=pl.ANY)],   # leave input in HBM
        out_specs=pl.BlockSpec(memory_space=pl.ANY),    # write output directly in HBM
        scratch_shapes=[pltpu.SemaphoreType.DMA((num_chunks,))],
    )(x)

    if out.shape != orig_shape:
        out = out.reshape(orig_shape)
    return out


if __name__ == "__main__":
    key = jax.random.PRNGKey(0)

    # Small NCHW-like activation, consistent with a generic nn.Module forward.
    x = jax.random.normal(key, (2, 4, 16, 16), dtype=jnp.float32)
    y = identity(x)
    jax.block_until_ready(y)
    assert y.shape == x.shape and y.dtype == x.dtype
    assert bool(jnp.all(y == x))

    # Ragged, non-128-divisible bf16 input: no padding / reshaping needed.
    xb = jax.random.normal(jax.random.PRNGKey(1), (3, 5, 7), dtype=jnp.bfloat16)
    yb = identity(xb)
    jax.block_until_ready(yb)
    assert yb.shape == xb.shape and yb.dtype == xb.dtype
    assert bool(jnp.all(yb == xb))

    # Explicitly exercise the multi-DMA (chunked) path.
    xc = jax.random.normal(jax.random.PRNGKey(2), (16, 64, 128), dtype=jnp.float32)
    yc = identity(xc, min_bytes_per_chunk=1)
    jax.block_until_ready(yc)
    assert bool(jnp.all(yc == xc))

    print("KERNEL_OK")
</pallas_src>

<mosaic_0001>
module attributes {stable_mosaic.version = 11 : i64} {
  func.func @kernel(%arg0: memref<2x4x16x16xf32, #tpu.memory_space<any>>, %arg1: memref<2x4x16x16xf32, #tpu.memory_space<any>>, %arg2: memref<1x!tpu.dma_semaphore, #tpu.memory_space<semaphore_mem>>) attributes {dimension_semantics = [], scalar_prefetch = 0 : i64, scratch_operands = 1 : i64, tpu.core_type = #tpu.core_type<tc>} {
    %c0_i32 = arith.constant 0 : i32
    %0 = tpu.memref_slice %arg2[%c0_i32] : memref<1x!tpu.dma_semaphore, #tpu.memory_space<semaphore_mem>> -> memref<1x!tpu.dma_semaphore, #tpu.memory_space<semaphore_mem>>
    %1 = tpu.memref_squeeze %0 : memref<1x!tpu.dma_semaphore, #tpu.memory_space<semaphore_mem>> -> memref<!tpu.dma_semaphore, #tpu.memory_space<semaphore_mem>>
    tpu.enqueue_dma source(%arg0 : memref<2x4x16x16xf32, #tpu.memory_space<any>>) target(%arg1 : memref<2x4x16x16xf32, #tpu.memory_space<any>>) target_semaphore(%1 : memref<!tpu.dma_semaphore, #tpu.memory_space<semaphore_mem>>)
    %c0_i32_0 = arith.constant 0 : i32
    %2 = tpu.memref_slice %arg2[%c0_i32_0] : memref<1x!tpu.dma_semaphore, #tpu.memory_space<semaphore_mem>> -> memref<1x!tpu.dma_semaphore, #tpu.memory_space<semaphore_mem>>
    %3 = tpu.memref_squeeze %2 : memref<1x!tpu.dma_semaphore, #tpu.memory_space<semaphore_mem>> -> memref<!tpu.dma_semaphore, #tpu.memory_space<semaphore_mem>>
    tpu.wait_dma2 semaphore(%3 : memref<!tpu.dma_semaphore, #tpu.memory_space<semaphore_mem>>) src(%arg0 : memref<2x4x16x16xf32, #tpu.memory_space<any>>) dst(%arg1 : memref<2x4x16x16xf32, #tpu.memory_space<any>>)
    return
  }
}

</mosaic_0001>

<bundles_post_ra>
// kernel: tpu_custom_call.1
= control target key start
LH: loop header
LB: loop body
LE: loop exit
PB: predicated region body
PF: predicated region fallthrough
CT: control target
= control target key end

     0   :  { %s36_s6 = smov [#allocation2]   ;;  %s37_s7 = smov [#allocation3]   ;;  %s55_s0 = inlined_call_operand.hbm [shape: f32[2,4,16,16], index: 0, kind: input, shape index: {}]   ;;  %s56_s1 = inlined_call_operand.hbm [shape: f32[2,4,16,16], index: 1, kind: output, shape index: {}]  }
   0x1   :  { %s38_s8 = smov 0  }
   0x2   :  { %18 = dma.general %s55_s0, 2048, %s56_s1, %s36_s6, %s37_s7, [#allocation4], %s38_s8, 0  }
   0x3   :  { %34 = dma.done.wait [#allocation2], 2048 }
   0x4   :  { %35 = vsyncadd [#allocation2], 4294965248 }
   0x5   :  { %24 = vsyncmov [#allocation2] }
   0x8   :  { %s25_s13 = vpop.sfrf %24 }
   0x9   :  { %p30_p0 = scmp.ne.s32.totalorder %s25_s13, 0 }
   0xb   :  { %29 = shalt.err (%p30_p0)  }

</bundles_post_ra>
